<compile_context>
chip_gen: v7x
topology: tpu7x:2x2x1
jax: 0.10.0
libtpu: 0.0.40
codegen_flags: <defaults>
</compile_context>

<pallas_src>
from functools import partial

import jax
import jax.numpy as jnp
from jax.experimental import pallas as pl
from jax.experimental.pallas import tpu as pltpu


def _round_up(x, m):
    return (x + m - 1) // m * m


def _largest_dividing_tile(f128, cap):
    """Largest multiple of 128 that divides f128 and is <= cap (f128 % 128 == 0)."""
    best = 128
    t = 128
    while t <= min(f128, cap):
        if f128 % t == 0:
            best = t
        t += 128
    return best


def _choose_f_tile(d, f, nl):
    """Pick the F tile (multiple of 128, divides F_pad) and the padded F."""
    f128 = _round_up(f, 128)
    # Keep one bf16 weight tile <= ~4 MiB so the double-buffered weight fits
    # comfortably in v5e's 16 MiB default scoped VMEM / v7x's 64 MiB VMEM.
    tf_cap = max(128, ((4 << 20) // (2 * d)) // 128 * 128)
    tf = _largest_dividing_tile(f128, tf_cap)
    if nl == 1 and tf == f128 and f128 >= 256:
        # Single-layer / small-batch default: split F so the grid has >=2
        # parallel steps for the v7x megacore's second TensorCore.
        tf = _largest_dividing_tile(f128, f128 // 2)
    return tf, f128


def _choose_layer_block(nl, d, f_pad, tf):
    """Block 2-4 layers per grid step when weights are small (amortize step overhead)."""
    if tf != f_pad or nl <= 1:
        return 1
    per_layer_bytes = d * f_pad * 2  # bf16 weight
    for cand in (4, 3, 2):
        if nl % cand == 0 and cand * per_layer_bytes <= (4 << 20):
            return cand
    return 1


def _pooler_kernel(tok_ref, w_ref, b_ref, o_ref):
    # tok_ref: (L_blk, TB, D)  bf16   -- gathered tokens for this batch tile
    # w_ref:   (L_blk, D, TF)  bf16   -- weight tile(s), resident across batch tiles
    # b_ref:   (L_blk, 1, TF)  f32
    # o_ref:   (TB, L_blk*TF)  output dtype (lane-dense column slab)
    l_blk = tok_ref.shape[0]
    tf = o_ref.shape[1] // l_blk
    for l in range(l_blk):                       # static, unrolled
        y = jnp.dot(tok_ref[l], w_ref[l], preferred_element_type=jnp.float32)
        y = y + b_ref[l].astype(jnp.float32)
        o_ref[:, l * tf:(l + 1) * tf] = jnp.tanh(y).astype(o_ref.dtype)


def _multi_pooler_pallas(tok, w, b, out_dtype, tf, l_blk):
    """tok: (L, BSp, D) bf16; w: (L, D, F_pad) bf16; b: (L, 1, F_pad) f32.

    Returns the concatenated (BSp, L * F_pad) pooled output.
    """
    nl, bs_pad, d = tok.shape
    f_pad = w.shape[-1]
    n_ft = f_pad // tf
    n_lb = nl // l_blk
    tb = min(128, bs_pad)
    n_bt = bs_pad // tb
    out_itemsize = jnp.dtype(out_dtype).itemsize

    # Explicit VMEM budget: double-buffered tokens + weight tile + bias + output.
    vmem_bytes = 2 * (l_blk * tb * d * 2
                      + l_blk * d * tf * 2
                      + l_blk * tf * 4
                      + tb * l_blk * tf * out_itemsize)
    vmem_limit = int(min(max(vmem_bytes + (2 << 20), 16 << 20), 64 << 20))

    cost = pl.CostEstimate(
        flops=int(2 * bs_pad * nl * d * f_pad),
        transcendentals=int(bs_pad * nl * f_pad),
        bytes_accessed=int(nl * bs_pad * d * 2          # tokens
                           + n_bt * nl * d * f_pad * 2  # weights (re-read per batch tile)
                           + nl * f_pad * 4             # bias
                           + bs_pad * nl * f_pad * out_itemsize))

    return pl.pallas_call(
        _pooler_kernel,
        out_shape=jax.ShapeDtypeStruct((bs_pad, nl * f_pad), out_dtype),
        grid=(n_lb, n_ft, n_bt),                 # batch innermost -> weight tile resident
        in_specs=[
            pl.BlockSpec((l_blk, tb, d), lambda lb, ft, bt: (lb, bt, 0)),   # tokens
            pl.BlockSpec((l_blk, d, tf), lambda lb, ft, bt: (lb, 0, ft)),   # weight tile
            pl.BlockSpec((l_blk, 1, tf), lambda lb, ft, bt: (lb, 0, ft)),   # bias tile
        ],
        out_specs=pl.BlockSpec((tb, l_blk * tf),
                               lambda lb, ft, bt: (bt, lb * n_ft + ft)),
        compiler_params=pltpu.CompilerParams(
            dimension_semantics=("parallel", "parallel", "parallel"),
            vmem_limit_bytes=vmem_limit,
        ),
        cost_estimate=cost,
    )(tok, w, b)


@partial(jax.jit, static_argnums=(4, 5, 6))
def _forward(idx, hidden_states, w, b, nb_ft, tf, l_blk):
    """idx: (bs,) int32; hidden_states: tuple of (bs, seq, D); w: (L, D, F_pad); b: (L, 1, F_pad)."""
    nl, _, f_pad = w.shape
    bs, seq, _ = hidden_states[0].shape
    out_dtype = hidden_states[0].dtype

    # TODO(synk): OOB indices are clamped to [0, seq-1] instead of erroring
    # like the PyTorch gather.
    idx = jnp.clip(idx.astype(jnp.int32), 0, seq - 1)

    # Per-layer one-token gather BEFORE stacking: O(L*bs*D) bytes instead of
    # materializing the full O(L*bs*seq*D) stack of hidden states.
    toks = [jnp.take_along_axis(h, idx[:, None, None], axis=1)[:, 0, :]
            for h in hidden_states[:nl]]
    tok = jnp.stack(toks, axis=0).astype(w.dtype)        # (L, bs, D) bf16

    # Pad batch to a multiple of the bf16-native (16-row) batch tile.
    tb = min(128, _round_up(bs, 16))
    bs_pad = _round_up(bs, tb)
    if bs_pad != bs:
        tok = jnp.pad(tok, ((0, 0), (0, bs_pad - bs), (0, 0)))

    out = _multi_pooler_pallas(tok, w, b, out_dtype, tf, l_blk)  # (bs_pad, L*F_pad)

    # Padded batch rows hold tanh(bias)-like garbage; slice them off here.
    out = out[:bs]
    if f_pad != nb_ft:  # strip the zero-padded lane columns per layer
        out = out.reshape(bs, nl, f_pad)[:, :, :nb_ft].reshape(bs, nl * nb_ft)
    return out


class BertMultiPoolerPallas:
    """JAX/Pallas equivalent of the PyTorch BertMultiPooler."""

    def __init__(self, nb_layers=1, input_size=768, nb_ft=768, key=None,
                 compute_dtype=jnp.bfloat16):
        self.nb_layers = nb_layers
        self.input_size = input_size
        self.nb_ft = nb_ft
        if key is None:
            key = jax.random.PRNGKey(0)
        bound = 1.0 / float(input_size) ** 0.5
        ws, bs_ = [], []
        for _ in range(nb_layers):
            key, kw, kb = jax.random.split(key, 3)
            # Stored pre-transposed as (input_size, nb_ft) == PyTorch weight.T.
            ws.append(jax.random.uniform(kw, (input_size, nb_ft), jnp.float32,
                                         -bound, bound))
            bs_.append(jax.random.uniform(kb, (1, nb_ft), jnp.float32,
                                          -bound, bound))
        w = jnp.stack(ws)                               # (L, D, F) f32
        b = jnp.stack(bs_)                              # (L, 1, F) f32

        # Static tiling decisions (F tile, lane padding, layer blocking).
        self._tf, f_pad = _choose_f_tile(input_size, nb_ft, nb_layers)
        if f_pad != nb_ft:
            w = jnp.pad(w, ((0, 0), (0, 0), (0, f_pad - nb_ft)))
            b = jnp.pad(b, ((0, 0), (0, 0), (0, f_pad - nb_ft)))
        self._l_blk = _choose_layer_block(nb_layers, input_size, f_pad, self._tf)

        self.w = w.astype(compute_dtype)                # (L, D, F_pad) bf16
        self.b = b                                      # (L, 1, F_pad) f32

    def __call__(self, hidden_states, idx=0):
        states = tuple(hidden_states[: self.nb_layers])
        bs = states[0].shape[0]
        if isinstance(idx, int):
            idx_arr = jnp.full((bs,), idx, dtype=jnp.int32)
        else:
            idx_arr = jnp.asarray(idx).reshape(-1).astype(jnp.int32)
        return _forward(idx_arr, states, self.w, self.b,
                        self.nb_ft, self._tf, self._l_blk)


def _reference(model, hidden_states, idx):
    """Pure-JAX reference (same bf16-rounded params, f32 math)."""
    outs = []
    for i in range(model.nb_layers):
        tok = jnp.take_along_axis(
            hidden_states[i], idx.reshape(-1, 1, 1), axis=1)[:, 0, :]
        tok = tok.astype(model.w.dtype).astype(jnp.float32)
        w_i = model.w[i, :, :model.nb_ft].astype(jnp.float32)
        b_i = model.b[i, :, :model.nb_ft]
        outs.append(jnp.tanh(tok @ w_i + b_i))
    return jnp.concatenate(outs, axis=-1)


if __name__ == "__main__":
    key = jax.random.PRNGKey(0)

    def run_case(nb_layers, hidden, nb_ft, bs, seq, key):
        key, k_states, k_idx, k_params = jax.random.split(key, 4)
        state_keys = jax.random.split(k_states, nb_layers)
        hidden_states = [
            jax.random.normal(state_keys[i], (bs, seq, hidden), jnp.float32)
            for i in range(nb_layers)
        ]
        idx = jax.random.randint(k_idx, (bs,), 0, seq, dtype=jnp.int32)

        model = BertMultiPoolerPallas(nb_layers=nb_layers, input_size=hidden,
                                      nb_ft=nb_ft, key=k_params)

        out = jax.block_until_ready(model(hidden_states, idx=idx))
        ref = _reference(model, hidden_states, idx)
        assert out.shape == (bs, nb_ft * nb_layers), out.shape
        err = float(jnp.max(jnp.abs(out - ref)))
        assert err < 2e-3, err

        # Also exercise the int-idx path (like the PyTorch default idx=0).
        out0 = jax.block_until_ready(model(hidden_states, idx=0))
        ref0 = _reference(model, hidden_states, jnp.zeros((bs,), jnp.int32))
        assert float(jnp.max(jnp.abs(out0 - ref0))) < 2e-3
        return key

    # Case 1: 2 layers, F=96 -> lane-padded to 128, layer-blocked (l_blk=2).
    key = run_case(nb_layers=2, hidden=64, nb_ft=96, bs=2, seq=8, key=key)
    # Case 2: 1 layer, F=256 split into two 128-wide tiles (megacore split).
    key = run_case(nb_layers=1, hidden=256, nb_ft=256, bs=2, seq=8, key=key)

    print("KERNEL_OK")
</pallas_src>

<mosaic_0001>
module attributes {stable_mosaic.version = 11 : i64} {
  func.func @_pooler_kernel(%arg0: i32, %arg1: i32, %arg2: i32, %arg3: memref<2x16x64xbf16, #tpu.memory_space<vmem>>, %arg4: memref<2x64x128xbf16, #tpu.memory_space<vmem>>, %arg5: memref<2x1x128xf32, #tpu.memory_space<vmem>>, %arg6: memref<16x256xf32, #tpu.memory_space<vmem>>) attributes {dimension_semantics = [#tpu.dimension_semantics<parallel>, #tpu.dimension_semantics<parallel>, #tpu.dimension_semantics<parallel>], iteration_bounds = array<i64: 1, 1, 1>, scalar_prefetch = 0 : i64, scratch_operands = 0 : i64, tpu.core_type = #tpu.core_type<tc>, window_params = [{transform_indices = @transform_0, window_bounds = array<i64: 2, 16, 64>}, {transform_indices = @transform_1, window_bounds = array<i64: 2, 64, 128>}, {transform_indices = @transform_2, window_bounds = array<i64: 2, 1, 128>}, {transform_indices = @transform_3, window_bounds = array<i64: 16, 256>}]} {
    %c0 = arith.constant 0 : index
    %c0_0 = arith.constant 0 : index
    %c0_1 = arith.constant 0 : index
    %0 = vector.load %arg3[%c0, %c0_0, %c0_1] : memref<2x16x64xbf16, #tpu.memory_space<vmem>>, vector<1x16x64xbf16>
    %1 = vector.shape_cast %0 : vector<1x16x64xbf16> to vector<16x64xbf16>
    %c0_2 = arith.constant 0 : index
    %c0_3 = arith.constant 0 : index
    %c0_4 = arith.constant 0 : index
    %2 = vector.load %arg4[%c0_2, %c0_3, %c0_4] : memref<2x64x128xbf16, #tpu.memory_space<vmem>>, vector<1x64x128xbf16>
    %3 = vector.shape_cast %2 : vector<1x64x128xbf16> to vector<64x128xbf16>
    %cst = arith.constant dense<0.000000e+00> : vector<16x128xf32>
    %4 = tpu.matmul %1, %3, %cst {dimension_numbers = #tpu.dot_dimension_numbers<[1], [0], [0], [1], [0, 0, 1, 1], [], []>} : vector<16x64xbf16>, vector<64x128xbf16>, vector<16x128xf32> -> vector<16x128xf32>
    %c0_5 = arith.constant 0 : index
    %c0_6 = arith.constant 0 : index
    %c0_7 = arith.constant 0 : index
    %5 = vector.load %arg5[%c0_5, %c0_6, %c0_7] : memref<2x1x128xf32, #tpu.memory_space<vmem>>, vector<1x1x128xf32>
    %6 = vector.shape_cast %5 : vector<1x1x128xf32> to vector<1x128xf32>
    %7 = vector.broadcast %6 : vector<1x128xf32> to vector<16x128xf32>
    %8 = arith.addf %4, %7 : vector<16x128xf32>
    %9 = math.tanh %8 : vector<16x128xf32>
    %c0_8 = arith.constant 0 : index
    %c0_9 = arith.constant 0 : index
    %10 = vector.load %arg6[%c0_8, %c0_9] : memref<16x256xf32, #tpu.memory_space<vmem>>, vector<16x128xf32>
    tpu.vector_store %arg6[%c0_8, %c0_9], %9 {strides = array<i32>} : memref<16x256xf32, #tpu.memory_space<vmem>>, vector<16x128xf32>,
    %c1 = arith.constant 1 : index
    %c0_10 = arith.constant 0 : index
    %c0_11 = arith.constant 0 : index
    %11 = vector.load %arg3[%c1, %c0_10, %c0_11] : memref<2x16x64xbf16, #tpu.memory_space<vmem>>, vector<1x16x64xbf16>
    %12 = vector.shape_cast %11 : vector<1x16x64xbf16> to vector<16x64xbf16>
    %c1_12 = arith.constant 1 : index
    %c0_13 = arith.constant 0 : index
    %c0_14 = arith.constant 0 : index
    %13 = vector.load %arg4[%c1_12, %c0_13, %c0_14] : memref<2x64x128xbf16, #tpu.memory_space<vmem>>, vector<1x64x128xbf16>
    %14 = vector.shape_cast %13 : vector<1x64x128xbf16> to vector<64x128xbf16>
    %cst_15 = arith.constant dense<0.000000e+00> : vector<16x128xf32>
    %15 = tpu.matmul %12, %14, %cst_15 {dimension_numbers = #tpu.dot_dimension_numbers<[1], [0], [0], [1], [0, 0, 1, 1], [], []>} : vector<16x64xbf16>, vector<64x128xbf16>, vector<16x128xf32> -> vector<16x128xf32>
    %c1_16 = arith.constant 1 : index
    %c0_17 = arith.constant 0 : index
    %c0_18 = arith.constant 0 : index
    %16 = vector.load %arg5[%c1_16, %c0_17, %c0_18] : memref<2x1x128xf32, #tpu.memory_space<vmem>>, vector<1x1x128xf32>
    %17 = vector.shape_cast %16 : vector<1x1x128xf32> to vector<1x128xf32>
    %18 = vector.broadcast %17 : vector<1x128xf32> to vector<16x128xf32>
    %19 = arith.addf %15, %18 : vector<16x128xf32>
    %20 = math.tanh %19 : vector<16x128xf32>
    %c0_19 = arith.constant 0 : index
    %c128 = arith.constant 128 : index
    %21 = vector.load %arg6[%c0_19, %c128] : memref<16x256xf32, #tpu.memory_space<vmem>>, vector<16x128xf32>
    tpu.vector_store %arg6[%c0_19, %c128], %20 {strides = array<i32>} : memref<16x256xf32, #tpu.memory_space<vmem>>, vector<16x128xf32>,
    return
  }
  func.func @transform_0(%arg0: i32, %arg1: i32, %arg2: i32) -> (i32, i32, i32) {
    %c0_i32 = arith.constant 0 : i32
    %c0_i32_0 = arith.constant 0 : i32
    return %arg0, %arg2, %c0_i32 : i32, i32, i32
  }
  func.func @transform_1(%arg0: i32, %arg1: i32, %arg2: i32) -> (i32, i32, i32) {
    %c0_i32 = arith.constant 0 : i32
    %c0_i32_0 = arith.constant 0 : i32
    return %arg0, %c0_i32, %arg1 : i32, i32, i32
  }
  func.func @transform_2(%arg0: i32, %arg1: i32, %arg2: i32) -> (i32, i32, i32) {
    %c0_i32 = arith.constant 0 : i32
    %c0_i32_0 = arith.constant 0 : i32
    return %arg0, %c0_i32, %arg1 : i32, i32, i32
  }
  func.func @transform_3(%arg0: i32, %arg1: i32, %arg2: i32) -> (i32, i32) {
    %c1_i32 = arith.constant 1 : i32
    %0 = arith.muli %arg0, %c1_i32 : i32
    %1 = arith.addi %0, %arg1 : i32
    %c0_i32 = arith.constant 0 : i32
    return %arg2, %1 : i32, i32
  }
}

</mosaic_0001>

<bundles_post_ra>
// kernel: _forward.1
= control target key start
LH: loop header
LB: loop body
LE: loop exit
PB: predicated region body
PF: predicated region fallthrough
CT: control target
= control target key end

     0   :  { %v326_v0 = vmov 0.0   ;;  %vm327_vm0 = vmmov 0   ;;  %vm75_vm1 = vcmask 523264   ;;  %s396_s1 = inlined_call_operand.vmem [shape: bf16[2,64,128], index: 1, kind: input, shape index: {}]   ;;  %s397_s0 = inlined_call_operand.vmem [shape: bf16[2,16,64], index: 0, kind: input, shape index: {}]   ;;  %s398_s2 = inlined_call_operand.vmem [shape: f32[2,1,128], index: 2, kind: input, shape index: {}]   ;;  %s399_s3 = inlined_call_operand.vmem [shape: f32[16,256], index: 3, kind: output, shape index: {}]  }
   0x1   :  { %282 = vmatprep.subr.bf16.mxu0 %v326_v0  ;;  %294 = vmatprep.subr.bf16.mxu1 %v326_v0  ;;  %v308_v1 = vld [vmem:[%s396_s1] sm:$0xff]   ;;  %v310_v3 = vld [vmem:[%s396_s1 + $0x8] sm:$0xff]   ;;  %v312_v5 = vld [vmem:[%s396_s1 + $0x10] sm:$0xff]  }
   0x2   :  { %v309_v2 = vld [vmem:[%s396_s1 + $0x20] sm:$0xff]   ;;  %290 = vmatprep.mubr.msk.bf16.mxu0 %vm327_vm0, %v326_v0  ;;  %302 = vmatprep.mubr.msk.bf16.mxu1 %vm327_vm0, %v326_v0  ;;  %v311_v4 = vld [vmem:[%s396_s1 + $0x28] sm:$0xff]   ;;  %v313_v6 = vld [vmem:[%s396_s1 + $0x30] sm:$0xff]  }
   0x3   :  { %283 = vmatpush3.bf16.msra.mxu0 %v308_v1  ;;  %295 = vmatpush3.bf16.msra.mxu1 %v309_v2  ;;  %v314_v7 = vld [vmem:[%s396_s1 + $0x18] sm:$0xff]   ;;  %v316_v9 = vld [vmem:[%s397_s0] sm:$0xff]   ;;  %v317_v10 = vld [vmem:[%s397_s0 + $0x8] sm:$0xff]  }
   0x4   :  { %284 = vmatprep.subr.bf16.mxu0 %v326_v0  ;;  %296 = vmatprep.subr.bf16.mxu1 %v326_v0  ;;  %v315_v8 = vld [vmem:[%s396_s1 + $0x38] sm:$0xff]   ;;  %v247_v11 = vld [vmem:[%s398_s2] ss:$0 sm:$0xff]  ;;  %v265_v12 = vld [vmem:[%s398_s2 + $0x1] ss:$0 sm:$0xff] }
   0x7   :  { %285 = vmatpush3.bf16.msra.mxu0 %v310_v3  ;;  %297 = vmatpush3.bf16.msra.mxu1 %v311_v4 }
   0x8   :  { %286 = vmatprep.subr.bf16.mxu0 %v326_v0  ;;  %298 = vmatprep.subr.bf16.mxu1 %v326_v0 }
   0xb   :  { %287 = vmatpush3.bf16.msra.mxu0 %v312_v5  ;;  %299 = vmatpush3.bf16.msra.mxu1 %v313_v6 }
   0xc   :  { %288 = vmatprep.subr.bf16.mxu0 %v326_v0  ;;  %300 = vmatprep.subr.bf16.mxu1 %v326_v0 }
   0xf   :  { %289 = vmatpush3.bf16.msra.mxu0 %v314_v7  ;;  %301 = vmatpush3.bf16.msra.mxu1 %v315_v8 }
  0x12   :  { %291 = vmatmul.mubr.msk.bf16.vlgmr.msra.gmra.mrb[0].mxu0 %vm75_vm1, %v316_v9  ;;  %303 = vmatmul.mubr.msk.bf16.vlgmr.msra.gmra.mrb[0].mxu1 %vm75_vm1, %v317_v10 }
  0xe5   :  { %v113_v13 = vpop.f32.mrb[0].mxu0  ;;  %v210_v15 = vpop.f32.mrb[0].mxu1 }
  0xe6   :  { %v114_v14 = vadd.f32 %v247_v11, %v113_v13  ;;  %v292_v16 = vpop.f32.mrb[1].mxu0  ;;  %v211_v17 = vadd.f32 %v265_v12, %v210_v15  ;;  %v304_v18 = vpop.f32.mrb[1].mxu1 }
  0xe7   :  { %v116_v19 = vpop.f32.mrb[2].mxu0  ;;  %v213_v21 = vpop.f32.mrb[2].mxu1 }
  0xe8   :  { %318 = vtanh.f32 %v114_v14  ;;  %v117_v20 = vadd.f32 %v247_v11, %v116_v19  ;;  %v293_v22 = vpop.f32.mrb[3].mxu0  ;;  %v214_v23 = vadd.f32 %v265_v12, %v213_v21  ;;  %v305_v24 = vpop.f32.mrb[3].mxu1 }
  0xe9   :  { %320 = vtanh.f32 %v211_v17 }
  0xea   :  { %322 = vtanh.f32 %v117_v20 }
  0xeb   :  { %324 = vtanh.f32 %v214_v23 }
  0xf2   :  { %v319_v25 = vpop.eup %318 }
  0xf3   :  { %v321_v26 = vpop.eup %320  ;;  %122 = vst [vmem:[%s399_s3] sm:$0xff] %v319_v25 }
  0xf4   :  { %v323_v27 = vpop.eup %322  ;;  %219 = vst [vmem:[%s399_s3 + $0x8] sm:$0xff] %v321_v26 }
  0xf5   :  { %v325_v28 = vpop.eup %324  ;;  %123 = vst [vmem:[%s399_s3 + $0x10] sm:$0xff] %v323_v27 }
  0xf6   :  { %220 = vst [vmem:[%s399_s3 + $0x18] sm:$0xff] %v325_v28 }

</bundles_post_ra>
